<compile_context>
chip_gen: v6e
topology: v6e:2x2x1
jax: 0.10.0
libtpu: 0.0.40
codegen_flags: <defaults>
</compile_context>

<pallas_src>
import functools
import math

import jax
import jax.numpy as jnp
from jax.experimental import pallas as pl
from jax.experimental.pallas import tpu as pltpu


def _round_up(v, m):
    return (v + m - 1) // m * m


def _default_gate_dtype():
    """bf16 gate nonlinearities on chips with a bf16 VPU/EUP path (v6e+)."""
    try:
        kind = jax.devices()[0].device_kind.lower()
    except Exception:  # pragma: no cover
        return jnp.float32
    for old in ("v2", "v3", "v4", "v5"):
        if old in kind:
            return jnp.float32
    return jnp.bfloat16


# ---------------------------------------------------------------------------
# One-time parameter repack (hoisted off the per-step hot path).
# ---------------------------------------------------------------------------
def pack_params(wi, wh, b_i, b_h):
    """wi: [ind, 4*outd], wh: [outd, 4*outd], b_i/b_h: [1, 4*outd].

    Returns (wh_p, wi_p, b_p): per-gate lane-padded (gate width -> multiple of
    128), bf16 weights + f32 fused bias.  Call ONCE and reuse every step.
    """
    ind, four_outd = wi.shape
    outd = four_outd // 4
    d_p = _round_up(outd, 128)

    def pad_gates(w):  # [K, 4*outd] -> [K, 4*d_p], each gate lane-aligned.
        K = w.shape[0]
        w = w.reshape(K, 4, outd)
        w = jnp.pad(w, ((0, 0), (0, 0), (0, d_p - outd)))
        return w.reshape(K, 4 * d_p)

    wh_p = pad_gates(wh).astype(jnp.bfloat16)
    wi_p = pad_gates(wi).astype(jnp.bfloat16)
    bias = (b_i + b_h).reshape(4, outd)
    b_p = jnp.pad(bias, ((0, 0), (0, d_p - outd))).reshape(1, 4 * d_p)
    return wh_p, wi_p, b_p.astype(jnp.float32)


# ---------------------------------------------------------------------------
# Kernel
# ---------------------------------------------------------------------------
def plastic_lstm_cell_kernel(hx_ref, x_ref, cx_ref, wh_ref, wi_ref, b_ref,
                             hy_ref, cy_ref, *, gate_dtype):
    d = hy_ref.shape[-1]  # padded per-gate width (multiple of 128)

    # Two MXU matmuls into one f32 accumulator (same MAC count as a fused
    # [hx, x] matmul, but avoids materializing the concat in HBM).
    hx_b = hx_ref[...].astype(jnp.bfloat16)
    x_b = x_ref[...].astype(jnp.bfloat16)
    gates = jnp.dot(hx_b, wh_ref[...], preferred_element_type=jnp.float32)
    gates = gates + jnp.dot(x_b, wi_ref[...], preferred_element_type=jnp.float32)
    gates = gates + b_ref[...]  # [1, 4d] f32 bias broadcast

    # Gate slices are lane-aligned (d % 128 == 0) -> free static views.
    # Transcendentals in bf16 on v6e/v7x (gate_dtype), f32 otherwise.
    g = gates.astype(gate_dtype)
    ingate     = jax.nn.sigmoid(g[:, 0 * d:1 * d]).astype(jnp.float32)
    forgetgate = jax.nn.sigmoid(g[:, 1 * d:2 * d]).astype(jnp.float32)
    cellgate   = jnp.tanh(g[:, 2 * d:3 * d]).astype(jnp.float32)
    outgate    = jax.nn.sigmoid(g[:, 3 * d:4 * d]).astype(jnp.float32)

    # Cell-state math stays in f32.
    cy = forgetgate * cx_ref[...].astype(jnp.float32) + ingate * cellgate
    hy = outgate * jnp.tanh(cy)

    cy_ref[...] = cy.astype(cy_ref.dtype)
    hy_ref[...] = hy.astype(hy_ref.dtype)


# ---------------------------------------------------------------------------
# Per-step wrapper
# ---------------------------------------------------------------------------
_WEIGHT_SPEC_KWARGS = None  # memoized: Buffered(1) if supported, else {}


def plastic_lstm_cell(x, hx, cx, wh_p, wi_p, b_p, *, gate_dtype=None):
    """x: [B, ind], hx/cx: [B, outd]; wh_p/wi_p/b_p from pack_params().
    Returns (hy, cy) matching the PyTorch module's forward."""
    global _WEIGHT_SPEC_KWARGS

    B, outd = hx.shape
    ind = x.shape[-1]
    d_p = wh_p.shape[-1] // 4
    hy_dtype = hx.dtype
    # NOTE: for long recurrent rollouts with bf16 hidden state, consider
    # keeping cy in f32 instead of cx.dtype.
    cy_dtype = cx.dtype
    if gate_dtype is None:
        gate_dtype = _default_gate_dtype()

    # Batch tile: sublane-aligned, and >= 2 grid steps when B allows so the
    # "parallel" axis can shard over both v7x TensorCores.
    half = -(-B // 2)
    TB = min(max(_round_up(half, 8), 8), 256)
    TB = min(TB, _round_up(B, 8))
    B_p = _round_up(B, TB)
    grid = (B_p // TB,)

    # Only batch padding for x/hx (no K concat/pad).  cx gets per-gate lane
    # padding so cy/hy math matches the lane-padded gate slices.
    if B_p != B:
        x = jnp.pad(x, ((0, B_p - B), (0, 0)))
        hx = jnp.pad(hx, ((0, B_p - B), (0, 0)))
    if B_p != B or d_p != outd:
        cx = jnp.pad(cx, ((0, B_p - B), (0, d_p - outd)))

    kernel = functools.partial(plastic_lstm_cell_kernel, gate_dtype=gate_dtype)

    def build(resident_kwargs):
        return pl.pallas_call(
            kernel,
            out_shape=(
                jax.ShapeDtypeStruct((B_p, d_p), hy_dtype),
                jax.ShapeDtypeStruct((B_p, d_p), cy_dtype),
            ),
            grid_spec=pltpu.PrefetchScalarGridSpec(
                num_scalar_prefetch=0,
                grid=grid,
                in_specs=[
                    pl.BlockSpec((TB, outd), lambda i: (i, 0)),       # hx (batch-tiled)
                    pl.BlockSpec((TB, ind), lambda i: (i, 0)),        # x  (batch-tiled)
                    pl.BlockSpec((TB, d_p), lambda i: (i, 0)),        # cx (batch-tiled)
                    pl.BlockSpec((outd, 4 * d_p), lambda i: (0, 0),   # wh (VMEM-resident)
                                 **resident_kwargs),
                    pl.BlockSpec((ind, 4 * d_p), lambda i: (0, 0),    # wi (VMEM-resident)
                                 **resident_kwargs),
                    pl.BlockSpec((1, 4 * d_p), lambda i: (0, 0),      # bias
                                 **resident_kwargs),
                ],
                out_specs=[
                    pl.BlockSpec((TB, d_p), lambda i: (i, 0)),        # hy
                    pl.BlockSpec((TB, d_p), lambda i: (i, 0)),        # cy
                ],
            ),
            compiler_params=pltpu.CompilerParams(
                dimension_semantics=("parallel",),
                vmem_limit_bytes=48 * 1024 * 1024,   # headroom on v7x (64 MiB/TC)
            ),
        )

    if _WEIGHT_SPEC_KWARGS is not None:
        candidates = [_WEIGHT_SPEC_KWARGS]
    else:
        # Prefer single-buffering the grid-invariant weight blocks; fall back
        # to default double-buffering if this jax/Mosaic rejects Buffered(1).
        candidates = [{"pipeline_mode": pl.Buffered(1)}, {}]

    last_err = None
    hy_p = cy_p = None
    for resident_kwargs in candidates:
        try:
            hy_p, cy_p = build(resident_kwargs)(hx, x, cx, wh_p, wi_p, b_p)
            _WEIGHT_SPEC_KWARGS = resident_kwargs
            last_err = None
            break
        except Exception as e:  # fallback path for unsupported pipeline_mode
            last_err = e
    if last_err is not None:
        raise last_err

    # TODO(synk): recurrent callers should keep hy/cy in the padded layout
    # between steps instead of slicing + re-padding every step.
    if B_p == B and d_p == outd:
        return hy_p, cy_p
    return hy_p[:B, :outd], cy_p[:B, :outd]


# ---------------------------------------------------------------------------
# Init + reference + self-test
# ---------------------------------------------------------------------------
def init_params(key, ind, outd, scale=2):
    """PlasticLinear-style init: U(-scale/sqrt(fan_in), scale/sqrt(fan_in))."""
    k1, k2, k3, k4 = jax.random.split(key, 4)
    bi = scale / math.sqrt(ind)
    bh = scale / math.sqrt(outd)
    wi = jax.random.uniform(k1, (ind, 4 * outd), jnp.float32, -bi, bi)
    wh = jax.random.uniform(k2, (outd, 4 * outd), jnp.float32, -bh, bh)
    b_i = jax.random.uniform(k3, (1, 4 * outd), jnp.float32, -bi, bi)
    b_h = jax.random.uniform(k4, (1, 4 * outd), jnp.float32, -bh, bh)
    return wi, wh, b_i, b_h


def reference(x, hx, cx, wi, wh, bias):
    gates = hx @ wh + x @ wi + bias
    d = hx.shape[-1]
    i = jax.nn.sigmoid(gates[:, :d])
    f = jax.nn.sigmoid(gates[:, d:2 * d])
    g = jnp.tanh(gates[:, 2 * d:3 * d])
    o = jax.nn.sigmoid(gates[:, 3 * d:])
    cy = f * cx + i * g
    hy = o * jnp.tanh(cy)
    return hy, cy


def _run_case(key, B, ind, outd):
    kx, kh, kc, kp = jax.random.split(key, 4)
    x = jax.random.normal(kx, (B, ind), jnp.float32)
    hx = jax.random.normal(kh, (B, outd), jnp.float32)
    cx = jax.random.normal(kc, (B, outd), jnp.float32)
    wi, wh, b_i, b_h = init_params(kp, ind, outd, scale=2)

    # One-time weight repack (hoisted off the per-step path).
    wh_p, wi_p, b_p = pack_params(wi, wh, b_i, b_h)
    jax.block_until_ready((wh_p, wi_p, b_p))

    hy, cy = plastic_lstm_cell(x, hx, cx, wh_p, wi_p, b_p)
    jax.block_until_ready((hy, cy))

    hy_ref, cy_ref = reference(x, hx, cx, wi, wh, b_i + b_h)
    # Loose tolerance: matmul operands rounded to bf16 (f32 accumulation),
    # gate transcendentals possibly in bf16 on v6e/v7x.
    assert jnp.allclose(hy, hy_ref, atol=5e-2, rtol=5e-2), "hy mismatch"
    assert jnp.allclose(cy, cy_ref, atol=5e-2, rtol=5e-2), "cy mismatch"


if __name__ == "__main__":
    key = jax.random.PRNGKey(0)
    k1, k2 = jax.random.split(key)
    # Small unaligned shape (exercises lane/batch padding path).
    _run_case(k1, B=8, ind=32, outd=32)
    # Lane-aligned shape, 2 batch tiles (v7x megacore path).
    _run_case(k2, B=16, ind=128, outd=128)
    print("KERNEL_OK")
</pallas_src>

<mosaic_0001>
module attributes {stable_mosaic.version = 11 : i64} {
  func.func @plastic_lstm_cell_kernel(%arg0: i32, %arg1: memref<8x32xf32, #tpu.memory_space<vmem>>, %arg2: memref<8x32xf32, #tpu.memory_space<vmem>>, %arg3: memref<8x128xf32, #tpu.memory_space<vmem>>, %arg4: memref<32x512xbf16, #tpu.memory_space<vmem>>, %arg5: memref<32x512xbf16, #tpu.memory_space<vmem>>, %arg6: memref<1x512xf32, #tpu.memory_space<vmem>>, %arg7: memref<8x128xf32, #tpu.memory_space<vmem>>, %arg8: memref<8x128xf32, #tpu.memory_space<vmem>>) attributes {dimension_semantics = [#tpu.dimension_semantics<parallel>], iteration_bounds = array<i64: 1>, scalar_prefetch = 0 : i64, scratch_operands = 0 : i64, tpu.core_type = #tpu.core_type<tc>, window_params = [{transform_indices = @transform_0, window_bounds = array<i64: 8, 32>}, {transform_indices = @transform_1, window_bounds = array<i64: 8, 32>}, {transform_indices = @transform_2, window_bounds = array<i64: 8, 128>}, {pipeline_mode = #tpu.pipeline_mode<synchronous>, transform_indices = @transform_3, window_bounds = array<i64: 32, 512>}, {pipeline_mode = #tpu.pipeline_mode<synchronous>, transform_indices = @transform_4, window_bounds = array<i64: 32, 512>}, {pipeline_mode = #tpu.pipeline_mode<synchronous>, transform_indices = @transform_5, window_bounds = array<i64: 1, 512>}, {transform_indices = @transform_6, window_bounds = array<i64: 8, 128>}, {transform_indices = @transform_7, window_bounds = array<i64: 8, 128>}]} {
    %c0 = arith.constant 0 : index
    %c0_0 = arith.constant 0 : index
    %0 = vector.load %arg1[%c0, %c0_0] : memref<8x32xf32, #tpu.memory_space<vmem>>, vector<8x32xf32>
    %1 = arith.truncf %0 : vector<8x32xf32> to vector<8x32xbf16>
    %c0_1 = arith.constant 0 : index
    %c0_2 = arith.constant 0 : index
    %2 = vector.load %arg2[%c0_1, %c0_2] : memref<8x32xf32, #tpu.memory_space<vmem>>, vector<8x32xf32>
    %3 = arith.truncf %2 : vector<8x32xf32> to vector<8x32xbf16>
    %c0_3 = arith.constant 0 : index
    %c0_4 = arith.constant 0 : index
    %4 = vector.load %arg4[%c0_3, %c0_4] : memref<32x512xbf16, #tpu.memory_space<vmem>>, vector<32x512xbf16>
    %cst = arith.constant dense<0.000000e+00> : vector<8x512xf32>
    %5 = tpu.matmul %1, %4, %cst {dimension_numbers = #tpu.dot_dimension_numbers<[1], [0], [0], [1], [0, 0, 1, 1], [], []>} : vector<8x32xbf16>, vector<32x512xbf16>, vector<8x512xf32> -> vector<8x512xf32>
    %c0_5 = arith.constant 0 : index
    %c0_6 = arith.constant 0 : index
    %6 = vector.load %arg5[%c0_5, %c0_6] : memref<32x512xbf16, #tpu.memory_space<vmem>>, vector<32x512xbf16>
    %cst_7 = arith.constant dense<0.000000e+00> : vector<8x512xf32>
    %7 = tpu.matmul %3, %6, %cst_7 {dimension_numbers = #tpu.dot_dimension_numbers<[1], [0], [0], [1], [0, 0, 1, 1], [], []>} : vector<8x32xbf16>, vector<32x512xbf16>, vector<8x512xf32> -> vector<8x512xf32>
    %8 = arith.addf %5, %7 : vector<8x512xf32>
    %c0_8 = arith.constant 0 : index
    %c0_9 = arith.constant 0 : index
    %9 = vector.load %arg6[%c0_8, %c0_9] : memref<1x512xf32, #tpu.memory_space<vmem>>, vector<1x512xf32>
    %10 = vector.broadcast %9 : vector<1x512xf32> to vector<8x512xf32>
    %11 = arith.addf %8, %10 : vector<8x512xf32>
    %12 = arith.truncf %11 : vector<8x512xf32> to vector<8x512xbf16>
    %13 = vector.extract_strided_slice %12 {offsets = [0, 0], sizes = [8, 128], strides = [1, 1]} : vector<8x512xbf16> to vector<8x128xbf16>
    %14 = arith.negf %13 : vector<8x128xbf16>
    %15 = math.exp %14 : vector<8x128xbf16>
    %cst_10 = arith.constant 1.000000e+00 : bf16
    %16 = vector.broadcast %cst_10 : bf16 to vector<8x128xbf16>
    %17 = arith.addf %16, %15 : vector<8x128xbf16>
    %18 = arith.divf %16, %17 : vector<8x128xbf16>
    %19 = arith.extf %18 : vector<8x128xbf16> to vector<8x128xf32>
    %20 = vector.extract_strided_slice %12 {offsets = [0, 128], sizes = [8, 128], strides = [1, 1]} : vector<8x512xbf16> to vector<8x128xbf16>
    %21 = arith.negf %20 : vector<8x128xbf16>
    %22 = math.exp %21 : vector<8x128xbf16>
    %cst_11 = arith.constant 1.000000e+00 : bf16
    %23 = vector.broadcast %cst_11 : bf16 to vector<8x128xbf16>
    %24 = arith.addf %23, %22 : vector<8x128xbf16>
    %25 = arith.divf %23, %24 : vector<8x128xbf16>
    %26 = arith.extf %25 : vector<8x128xbf16> to vector<8x128xf32>
    %27 = vector.extract_strided_slice %12 {offsets = [0, 256], sizes = [8, 128], strides = [1, 1]} : vector<8x512xbf16> to vector<8x128xbf16>
    %28 = math.tanh %27 : vector<8x128xbf16>
    %29 = arith.extf %28 : vector<8x128xbf16> to vector<8x128xf32>
    %30 = vector.extract_strided_slice %12 {offsets = [0, 384], sizes = [8, 128], strides = [1, 1]} : vector<8x512xbf16> to vector<8x128xbf16>
    %31 = arith.negf %30 : vector<8x128xbf16>
    %32 = math.exp %31 : vector<8x128xbf16>
    %cst_12 = arith.constant 1.000000e+00 : bf16
    %33 = vector.broadcast %cst_12 : bf16 to vector<8x128xbf16>
    %34 = arith.addf %33, %32 : vector<8x128xbf16>
    %35 = arith.divf %33, %34 : vector<8x128xbf16>
    %36 = arith.extf %35 : vector<8x128xbf16> to vector<8x128xf32>
    %c0_13 = arith.constant 0 : index
    %c0_14 = arith.constant 0 : index
    %37 = vector.load %arg3[%c0_13, %c0_14] : memref<8x128xf32, #tpu.memory_space<vmem>>, vector<8x128xf32>
    %38 = arith.mulf %26, %37 : vector<8x128xf32>
    %39 = arith.mulf %19, %29 : vector<8x128xf32>
    %40 = arith.addf %38, %39 : vector<8x128xf32>
    %41 = math.tanh %40 : vector<8x128xf32>
    %42 = arith.mulf %36, %41 : vector<8x128xf32>
    %c0_15 = arith.constant 0 : index
    %c0_16 = arith.constant 0 : index
    %43 = vector.load %arg8[%c0_15, %c0_16] : memref<8x128xf32, #tpu.memory_space<vmem>>, vector<8x128xf32>
    tpu.vector_store %arg8[%c0_15, %c0_16], %40 {strides = array<i32>} : memref<8x128xf32, #tpu.memory_space<vmem>>, vector<8x128xf32>,
    %c0_17 = arith.constant 0 : index
    %c0_18 = arith.constant 0 : index
    %44 = vector.load %arg7[%c0_17, %c0_18] : memref<8x128xf32, #tpu.memory_space<vmem>>, vector<8x128xf32>
    tpu.vector_store %arg7[%c0_17, %c0_18], %42 {strides = array<i32>} : memref<8x128xf32, #tpu.memory_space<vmem>>, vector<8x128xf32>,
    return
  }
  func.func @transform_0(%arg0: i32) -> (i32, i32) {
    %c0_i32 = arith.constant 0 : i32
    %c0_i32_0 = arith.constant 0 : i32
    return %arg0, %c0_i32 : i32, i32
  }
  func.func @transform_1(%arg0: i32) -> (i32, i32) {
    %c0_i32 = arith.constant 0 : i32
    %c0_i32_0 = arith.constant 0 : i32
    return %arg0, %c0_i32 : i32, i32
  }
  func.func @transform_2(%arg0: i32) -> (i32, i32) {
    %c0_i32 = arith.constant 0 : i32
    %c0_i32_0 = arith.constant 0 : i32
    return %arg0, %c0_i32 : i32, i32
  }
  func.func @transform_3(%arg0: i32) -> (i32, i32) {
    %c0_i32 = arith.constant 0 : i32
    %c0_i32_0 = arith.constant 0 : i32
    %c0_i32_1 = arith.constant 0 : i32
    return %c0_i32, %c0_i32_0 : i32, i32
  }
  func.func @transform_4(%arg0: i32) -> (i32, i32) {
    %c0_i32 = arith.constant 0 : i32
    %c0_i32_0 = arith.constant 0 : i32
    %c0_i32_1 = arith.constant 0 : i32
    return %c0_i32, %c0_i32_0 : i32, i32
  }
  func.func @transform_5(%arg0: i32) -> (i32, i32) {
    %c0_i32 = arith.constant 0 : i32
    %c0_i32_0 = arith.constant 0 : i32
    %c0_i32_1 = arith.constant 0 : i32
    return %c0_i32, %c0_i32_0 : i32, i32
  }
  func.func @transform_6(%arg0: i32) -> (i32, i32) {
    %c0_i32 = arith.constant 0 : i32
    %c0_i32_0 = arith.constant 0 : i32
    return %arg0, %c0_i32 : i32, i32
  }
  func.func @transform_7(%arg0: i32) -> (i32, i32) {
    %c0_i32 = arith.constant 0 : i32
    %c0_i32_0 = arith.constant 0 : i32
    return %arg0, %c0_i32 : i32, i32
  }
}

module attributes {stable_mosaic.version = 11 : i64} {
  func.func @plastic_lstm_cell_kernel(%arg0: i32, %arg1: memref<8x32xf32, #tpu.memory_space<vmem>>, %arg2: memref<8x32xf32, #tpu.memory_space<vmem>>, %arg3: memref<8x128xf32, #tpu.memory_space<vmem>>, %arg4: memref<32x512xbf16, #tpu.memory_space<vmem>>, %arg5: memref<32x512xbf16, #tpu.memory_space<vmem>>, %arg6: memref<1x512xf32, #tpu.memory_space<vmem>>, %arg7: memref<8x128xf32, #tpu.memory_space<vmem>>, %arg8: memref<8x128xf32, #tpu.memory_space<vmem>>) attributes {dimension_semantics = [#tpu.dimension_semantics<parallel>], iteration_bounds = array<i64: 1>, scalar_prefetch = 0 : i64, scratch_operands = 0 : i64, tpu.core_type = #tpu.core_type<tc>, window_params = [{transform_indices = @transform_0, window_bounds = array<i64: 8, 32>}, {transform_indices = @transform_1, window_bounds = array<i64: 8, 32>}, {transform_indices = @transform_2, window_bounds = array<i64: 8, 128>}, {pipeline_mode = #tpu.pipeline_mode<synchronous>, transform_indices = @transform_3, window_bounds = array<i64: 32, 512>}, {pipeline_mode = #tpu.pipeline_mode<synchronous>, transform_indices = @transform_4, window_bounds = array<i64: 32, 512>}, {pipeline_mode = #tpu.pipeline_mode<synchronous>, transform_indices = @transform_5, window_bounds = array<i64: 1, 512>}, {transform_indices = @transform_6, window_bounds = array<i64: 8, 128>}, {transform_indices = @transform_7, window_bounds = array<i64: 8, 128>}]} {
    %c0 = arith.constant 0 : index
    %c0_0 = arith.constant 0 : index
    %0 = vector.load %arg1[%c0, %c0_0] : memref<8x32xf32, #tpu.memory_space<vmem>>, vector<8x32xf32>
    %1 = arith.truncf %0 : vector<8x32xf32> to vector<8x32xbf16>
    %c0_1 = arith.constant 0 : index
    %c0_2 = arith.constant 0 : index
    %2 = vector.load %arg2[%c0_1, %c0_2] : memref<8x32xf32, #tpu.memory_space<vmem>>, vector<8x32xf32>
    %3 = arith.truncf %2 : vector<8x32xf32> to vector<8x32xbf16>
    %c0_3 = arith.constant 0 : index
    %c0_4 = arith.constant 0 : index
    %4 = vector.load %arg4[%c0_3, %c0_4] : memref<32x512xbf16, #tpu.memory_space<vmem>>, vector<32x512xbf16>
    %cst = arith.constant dense<0.000000e+00> : vector<8x512xf32>
    %5 = tpu.matmul %1, %4, %cst {dimension_numbers = #tpu.dot_dimension_numbers<[1], [0], [0], [1], [0, 0, 1, 1], [], []>} : vector<8x32xbf16>, vector<32x512xbf16>, vector<8x512xf32> -> vector<8x512xf32>
    %c0_5 = arith.constant 0 : index
    %c0_6 = arith.constant 0 : index
    %6 = vector.load %arg5[%c0_5, %c0_6] : memref<32x512xbf16, #tpu.memory_space<vmem>>, vector<32x512xbf16>
    %cst_7 = arith.constant dense<0.000000e+00> : vector<8x512xf32>
    %7 = tpu.matmul %3, %6, %cst_7 {dimension_numbers = #tpu.dot_dimension_numbers<[1], [0], [0], [1], [0, 0, 1, 1], [], []>} : vector<8x32xbf16>, vector<32x512xbf16>, vector<8x512xf32> -> vector<8x512xf32>
    %8 = arith.addf %5, %7 : vector<8x512xf32>
    %c0_8 = arith.constant 0 : index
    %c0_9 = arith.constant 0 : index
    %9 = vector.load %arg6[%c0_8, %c0_9] : memref<1x512xf32, #tpu.memory_space<vmem>>, vector<1x512xf32>
    %10 = vector.broadcast %9 : vector<1x512xf32> to vector<8x512xf32>
    %11 = arith.addf %8, %10 : vector<8x512xf32>
    %12 = arith.truncf %11 : vector<8x512xf32> to vector<8x512xbf16>
    %13 = vector.extract_strided_slice %12 {offsets = [0, 0], sizes = [8, 128], strides = [1, 1]} : vector<8x512xbf16> to vector<8x128xbf16>
    %14 = arith.negf %13 : vector<8x128xbf16>
    %15 = math.exp %14 : vector<8x128xbf16>
    %cst_10 = arith.constant 1.000000e+00 : bf16
    %16 = vector.broadcast %cst_10 : bf16 to vector<8x128xbf16>
    %17 = arith.addf %16, %15 : vector<8x128xbf16>
    %18 = arith.divf %16, %17 : vector<8x128xbf16>
    %19 = arith.extf %18 : vector<8x128xbf16> to vector<8x128xf32>
    %20 = vector.extract_strided_slice %12 {offsets = [0, 128], sizes = [8, 128], strides = [1, 1]} : vector<8x512xbf16> to vector<8x128xbf16>
    %21 = arith.negf %20 : vector<8x128xbf16>
    %22 = math.exp %21 : vector<8x128xbf16>
    %cst_11 = arith.constant 1.000000e+00 : bf16
    %23 = vector.broadcast %cst_11 : bf16 to vector<8x128xbf16>
    %24 = arith.addf %23, %22 : vector<8x128xbf16>
    %25 = arith.divf %23, %24 : vector<8x128xbf16>
    %26 = arith.extf %25 : vector<8x128xbf16> to vector<8x128xf32>
    %27 = vector.extract_strided_slice %12 {offsets = [0, 256], sizes = [8, 128], strides = [1, 1]} : vector<8x512xbf16> to vector<8x128xbf16>
    %28 = math.tanh %27 : vector<8x128xbf16>
    %29 = arith.extf %28 : vector<8x128xbf16> to vector<8x128xf32>
    %30 = vector.extract_strided_slice %12 {offsets = [0, 384], sizes = [8, 128], strides = [1, 1]} : vector<8x512xbf16> to vector<8x128xbf16>
    %31 = arith.negf %30 : vector<8x128xbf16>
    %32 = math.exp %31 : vector<8x128xbf16>
    %cst_12 = arith.constant 1.000000e+00 : bf16
    %33 = vector.broadcast %cst_12 : bf16 to vector<8x128xbf16>
    %34 = arith.addf %33, %32 : vector<8x128xbf16>
    %35 = arith.divf %33, %34 : vector<8x128xbf16>
    %36 = arith.extf %35 : vector<8x128xbf16> to vector<8x128xf32>
    %c0_13 = arith.constant 0 : index
    %c0_14 = arith.constant 0 : index
    %37 = vector.load %arg3[%c0_13, %c0_14] : memref<8x128xf32, #tpu.memory_space<vmem>>, vector<8x128xf32>
    %38 = arith.mulf %26, %37 : vector<8x128xf32>
    %39 = arith.mulf %19, %29 : vector<8x128xf32>
    %40 = arith.addf %38, %39 : vector<8x128xf32>
    %41 = math.tanh %40 : vector<8x128xf32>
    %42 = arith.mulf %36, %41 : vector<8x128xf32>
    %c0_15 = arith.constant 0 : index
    %c0_16 = arith.constant 0 : index
    %43 = vector.load %arg8[%c0_15, %c0_16] : memref<8x128xf32, #tpu.memory_space<vmem>>, vector<8x128xf32>
    tpu.vector_store %arg8[%c0_15, %c0_16], %40 {strides = array<i32>} : memref<8x128xf32, #tpu.memory_space<vmem>>, vector<8x128xf32>,
    %c0_17 = arith.constant 0 : index
    %c0_18 = arith.constant 0 : index
    %44 = vector.load %arg7[%c0_17, %c0_18] : memref<8x128xf32, #tpu.memory_space<vmem>>, vector<8x128xf32>
    tpu.vector_store %arg7[%c0_17, %c0_18], %42 {strides = array<i32>} : memref<8x128xf32, #tpu.memory_space<vmem>>, vector<8x128xf32>,
    return
  }
  func.func @transform_0(%arg0: i32) -> (i32, i32) {
    %c0_i32 = arith.constant 0 : i32
    %c0_i32_0 = arith.constant 0 : i32
    return %arg0, %c0_i32 : i32, i32
  }
  func.func @transform_1(%arg0: i32) -> (i32, i32) {
    %c0_i32 = arith.constant 0 : i32
    %c0_i32_0 = arith.constant 0 : i32
    return %arg0, %c0_i32 : i32, i32
  }
  func.func @transform_2(%arg0: i32) -> (i32, i32) {
    %c0_i32 = arith.constant 0 : i32
    %c0_i32_0 = arith.constant 0 : i32
    return %arg0, %c0_i32 : i32, i32
  }
  func.func @transform_3(%arg0: i32) -> (i32, i32) {
    %c0_i32 = arith.constant 0 : i32
    %c0_i32_0 = arith.constant 0 : i32
    %c0_i32_1 = arith.constant 0 : i32
    return %c0_i32, %c0_i32_0 : i32, i32
  }
  func.func @transform_4(%arg0: i32) -> (i32, i32) {
    %c0_i32 = arith.constant 0 : i32
    %c0_i32_0 = arith.constant 0 : i32
    %c0_i32_1 = arith.constant 0 : i32
    return %c0_i32, %c0_i32_0 : i32, i32
  }
  func.func @transform_5(%arg0: i32) -> (i32, i32) {
    %c0_i32 = arith.constant 0 : i32
    %c0_i32_0 = arith.constant 0 : i32
    %c0_i32_1 = arith.constant 0 : i32
    return %c0_i32, %c0_i32_0 : i32, i32
  }
  func.func @transform_6(%arg0: i32) -> (i32, i32) {
    %c0_i32 = arith.constant 0 : i32
    %c0_i32_0 = arith.constant 0 : i32
    return %arg0, %c0_i32 : i32, i32
  }
  func.func @transform_7(%arg0: i32) -> (i32, i32) {
    %c0_i32 = arith.constant 0 : i32
    %c0_i32_0 = arith.constant 0 : i32
    return %arg0, %c0_i32 : i32, i32
  }
}

</mosaic_0001>

<bundles_post_ra>
// kernel: tpu_custom_call.1
= control target key start
LH: loop header
LB: loop body
LE: loop exit
PB: predicated region body
PF: predicated region fallthrough
CT: control target
= control target key end

     0   :  { %13 = vsyncpa [#allocation3], 0  ;;  %s764_s0 = inlined_call_operand.hbm [shape: f32[8,32], index: 0, kind: input, shape index: {}]   ;;  %s765_s1 = inlined_call_operand.hbm [shape: f32[8,32], index: 1, kind: input, shape index: {}]   ;;  %s766_s2 = inlined_call_operand.hbm [shape: f32[8,128], index: 2, kind: input, shape index: {}]   ;;  %s767_s3 = inlined_call_operand.hbm [shape: bf16[32,512], index: 3, kind: input, shape index: {}]   ;;  %s768_s4 = inlined_call_operand.hbm [shape: bf16[32,512], index: 4, kind: input, shape index: {}]   ;;  %s769_s5 = inlined_call_operand.vmem [shape: f32[1,512], index: 5, kind: input, shape index: {}]   ;;  %s770_s6 = inlined_call_operand.hbm [shape: f32[8,128], index: 6, kind: output, shape index: {0}]   ;;  %s771_s7 = inlined_call_operand.hbm [shape: f32[8,128], index: 7, kind: output, shape index: {1}]  }
   0x1   :  { %14 = vsyncpa [#allocation6], 0 }
   0x2   :  { %15 = vsyncpa [#allocation9], 0 }
   0x3   :  { %16 = vsyncpa [#allocation4], 0 }
   0x4   :  { %17 = vsyncpa [#allocation13], 0  ;;  %s680_s24 = smov [#allocation5]   ;;  %s681_s26 = smov [#allocation8]  }
   0x5   :  { %s34_s25 = sshll.u32 %s680_s24, 4  ;;  %s53_s27 = sshll.u32 %s681_s26, 4  ;;  %s35_s25 = int_to_ptr.vmem [resolvable:$true] %s34_s25  ;;  %s54_s27 = int_to_ptr.vmem [resolvable:$true] %s53_s27 }
   0x6   :  { %s538_s28 = scalar_lea.vmem %s35_s25, 128  ;;  %p543_p1 = scmp.lt.s32.totalorder %s35_s25, %s35_s25 }
   0x7   :  { %p539_p0 = scmp.ne.s32.totalorder %s35_s25, %s538_s28  ;;  %p544_p2 = scmp.lt.s32.totalorder %s538_s28, %s538_s28 }
   0x9   :  { %p545_p3 = por %p544_p2, %p543_p1 }
   0xb   :  { %p546_p4 = pnand %p545_p3, %p539_p0 }
   0xd   :  { %549 = shalt.err (!%p546_p4)
}
   0xe   :  { %37 = dma.hbm_to_vmem [thread:$0]  %s765_s1, 128, %s35_s25, [#allocation6]  }
   0xf   :  { %s558_s8 = scalar_lea.vmem %s54_s27, 1024  ;;  %p563_p6 = scmp.lt.s32.totalorder %s54_s27, %s54_s27 }
  0x10   :  { %p559_p5 = scmp.ne.s32.totalorder %s54_s27, %s558_s8  ;;  %p564_p7 = scmp.lt.s32.totalorder %s558_s8, %s558_s8 }
  0x12   :  { %p565_p8 = por %p564_p7, %p563_p6 }
  0x14   :  { %p566_p9 = pnand %p565_p8, %p559_p5 }
  0x16   :  { %569 = shalt.err (!%p566_p9)
}
  0x17   :  { %s682_s9 = smov 256   ;;  %s683_s10 = smov 16  }
  0x18   :  { %59 = dma.hbm_to_vmem [thread:$0]  %s767_s3, 1024, %s54_s27, [#allocation9], %s682_s9, %s682_s9, %s683_s10  }
  0x19   :  { %s684_s13 = smov [#allocation2]   ;;  %s685_s15 = smov [#allocation7]  }
  0x1a   :  { %s24_s14 = sshll.u32 %s684_s13, 4  ;;  %s44_s1 = sshll.u32 %s685_s15, 4  ;;  %s25_s14 = int_to_ptr.vmem [resolvable:$true] %s24_s14  ;;  %s45_s1 = int_to_ptr.vmem [resolvable:$true] %s44_s1 }
  0x1b   :  { %s578_s16 = scalar_lea.vmem %s25_s14, 128  ;;  %p583_p11 = scmp.lt.s32.totalorder %s25_s14, %s25_s14 }
  0x1c   :  { %p579_p10 = scmp.ne.s32.totalorder %s25_s14, %s578_s16  ;;  %p584_p12 = scmp.lt.s32.totalorder %s578_s16, %s578_s16 }
  0x1e   :  { %p585_p13 = por %p584_p12, %p583_p11 }
  0x20   :  { %p586_p0 = pnand %p585_p13, %p579_p10 }
  0x22   :  { %589 = shalt.err (!%p586_p0)
}
  0x23   :  { %27 = dma.hbm_to_vmem [thread:$0]  %s764_s0, 128, %s25_s14, [#allocation3]  }
  0x24   :  { %s598_s19 = scalar_lea.vmem %s45_s1, 128  ;;  %p603_p2 = scmp.lt.s32.totalorder %s45_s1, %s45_s1 }
  0x25   :  { %p599_p1 = scmp.ne.s32.totalorder %s45_s1, %s598_s19  ;;  %p604_p3 = scmp.lt.s32.totalorder %s598_s19, %s598_s19 }
  0x27   :  { %p605_p4 = por %p604_p3, %p603_p2 }
  0x29   :  { %p606_p5 = pnand %p605_p4, %p599_p1 }
  0x2b   :  { %609 = shalt.err (!%p606_p5)
}
  0x2c   :  { %47 = dma.hbm_to_vmem [thread:$0]  %s766_s2, 128, %s45_s1, [#allocation6]  }
  0x2d   :  { %s686_s21 = smov [#allocation10]  }
  0x2e   :  { %s65_s22 = sshll.u32 %s686_s21, 4  ;;  %s66_s22 = int_to_ptr.vmem [resolvable:$true] %s65_s22 }
  0x2f   :  { %s618_s23 = scalar_lea.vmem %s66_s22, 1024  ;;  %p623_p7 = scmp.lt.s32.totalorder %s66_s22, %s66_s22 }
  0x30   :  { %p619_p6 = scmp.ne.s32.totalorder %s66_s22, %s618_s23  ;;  %p624_p8 = scmp.lt.s32.totalorder %s618_s23, %s618_s23 }
  0x32   :  { %p625_p9 = por %p624_p8, %p623_p7 }
  0x34   :  { %p626_p10 = pnand %p625_p9, %p619_p6 }
  0x36   :  { %629 = shalt.err (!%p626_p10)
}
  0x37   :  { %71 = dma.hbm_to_vmem [thread:$0]  %s768_s4, 1024, %s66_s22, [#allocation9], %s682_s9, %s682_s9, %s683_s10  }
  0x38   :  { %670 = dma.done.wait [#allocation3], 128  }
  0x39   :  { %671 = vsyncadd [#allocation3], 4294967168 }
  0x3a   :  { %672 = dma.done.wait [#allocation6], 256  }
  0x3b   :  { %673 = vsyncadd [#allocation6], 4294967040 }
  0x3c   :  { %674 = dma.done.wait [#allocation9], 2048  }
  0x3d   :  { %675 = vsyncadd [#allocation9], 4294965248  ;;  %v687_v0 = vmov 0   ;;  %v490_v1 = vld [vmem:[#allocation10 + $0x24] ss:$16 sps:$4 sm:$0xff]   ;;  %vm151_vm0 = vcmask 261120   ;;  %v364_v21 = vlaneseq }
  0x3e   :  { %187 = vmatprep.mubr.bf16.mxu0 %v687_v0  ;;  %228 = vmatprep.mubr.bf16.mxu1 %v687_v0  ;;  %v492_v2 = vld [vmem:[#allocation10 + $0x20] ss:$16 sps:$4 sm:$0xff]   ;;  %v493_v3 = vld [vmem:[#allocation10 + $0x4] ss:$16 sps:$4 sm:$0xff]   ;;  %v499_v7 = vld [vmem:[#allocation10 + $0x2c] ss:$16 sps:$4 sm:$0xff]  }
  0x3f   :  { %167 = vmatprep.subr.bf16.mxu0 %v490_v1  ;;  %v495_v4 = vld [vmem:[#allocation10] ss:$16 sps:$4 sm:$0xff]   ;;  %v498_v6 = vld [vmem:[#allocation8 + $0x24] ss:$16 sps:$4 sm:$0xff]   ;;  %v501_v8 = vld [vmem:[#allocation10 + $0x28] ss:$16 sps:$4 sm:$0xff]   ;;  %208 = vmatprep.subr.bf16.mxu1 %v499_v7 }
  0x40   :  { %168 = vmatpush1.bf16.msra.mxu0 %v492_v2  ;;  %v93_v5 = vld [vmem:[#allocation5] sm:$0xff]  ;;  %v505_v11 = vld [vmem:[#allocation10 + $0xc] ss:$16 sps:$4 sm:$0xff]   ;;  %209 = vmatpush1.bf16.msra.mxu1 %v501_v8  ;;  %v507_v13 = vld [vmem:[#allocation10 + $0x8] ss:$16 sps:$4 sm:$0xff]   ;;  %v365_v22 = vshrl.u32 %v364_v21, 7 }
  0x41   :  { %169 = vmatprep.subr.bf16.mxu0 %v493_v3  ;;  %v94_v9 = vpack.c.bf16 %v93_v5, %v93_v5  ;;  %v496_v10 = vld [vmem:[#allocation8 + $0x20] ss:$16 sps:$4 sm:$0xff]   ;;  %v504_v12 = vld [vmem:[#allocation8 + $0x4] ss:$16 sps:$4 sm:$0xff]   ;;  %210 = vmatprep.subr.bf16.mxu1 %v505_v11  ;;  %v510_v14 = vld [vmem:[#allocation8 + $0x2c] ss:$16 sps:$4 sm:$0xff]  }
  0x42   :  { %v502_v15 = vld [vmem:[#allocation8] ss:$16 sps:$4 sm:$0xff]   ;;  %v91_v16 = vld [vmem:[#allocation2] sm:$0xff]  ;;  %v366_v25 = vsub.s32 0, %v365_v22  ;;  %v370_v29 = vsub.s32 1, %v365_v22  ;;  %v378_v38 = vsub.s32 3, %v365_v22 }
  0x43   :  { %v508_v17 = vld [vmem:[#allocation8 + $0x28] ss:$16 sps:$4 sm:$0xff]   ;;  %v513_v18 = vld [vmem:[#allocation8 + $0xc] ss:$16 sps:$4 sm:$0xff]   ;;  %v92_v19 = vpack.c.bf16 %v91_v16, %v91_v16  ;;  %v374_v55 = vsub.s32 2, %v365_v22 }
  0x44   :  { %170 = vmatpush1.bf16.msra.mxu0 %v495_v4  ;;  %211 = vmatpush1.bf16.msra.mxu1 %v507_v13  ;;  %v511_v20 = vld [vmem:[#allocation8 + $0x8] ss:$16 sps:$4 sm:$0xff]  }
  0x45   :  { %292 = vmatprep.subr.bf16.mxu0 %v498_v6  ;;  %333 = vmatprep.subr.bf16.mxu1 %v510_v14  ;;  %v362_v27 = vld [vmem:[%s769_s5] sm:$0xf]  ;;  %v418_v11 = vld [vmem:[#allocation7] sm:$0xff]  ;;  %s688_s5 = smov [#allocation12]  }
  0x46   :  { %v367_v31 = vrot.slane %v362_v27, %v366_v25  ;;  %v371_v35 = vrot.slane %v362_v27, %v370_v29  ;;  %v379_v47 = vrot.slane %v362_v27, %v378_v38  ;;  %v375_v59 = vrot.slane %v362_v27, %v374_v55  ;;  %s442_s25 = sshll.u32 %s688_s5, 4  ;;  %s443_s25 = int_to_ptr.vmem [resolvable:$true] %s442_s25 }
  0x47   :  { %465 = vmatmul.mubr.msk.bf16.vlgmr.msra.gmra.mxu0 %vm151_vm0, %v94_v9  ;;  %466 = vmatmul.mubr.msk.bf16.vlgmr.msra.gmra.mxu1 %vm151_vm0, %v94_v9  ;;  %s630_s26 = scalar_lea.vmem %s443_s25, 128  ;;  %p635_p12 = scmp.lt.s32.totalorder %s443_s25, %s443_s25 }
  0x48   :  { %293 = vmatpush1.bf16.msra.mxu0 %v496_v10  ;;  %312 = vmatprep.mubr.bf16.mxu0 %v687_v0  ;;  %p631_p11 = scmp.ne.s32.totalorder %s443_s25, %s630_s26  ;;  %p636_p13 = scmp.lt.s32.totalorder %s630_s26, %s630_s26 }
  0x49   :  { %294 = vmatprep.subr.bf16.mxu0 %v504_v12  ;;  %334 = vmatpush1.bf16.msra.mxu1 %v508_v17 }
  0x4a   :  { %353 = vmatprep.mubr.bf16.mxu1 %v687_v0  ;;  %335 = vmatprep.subr.bf16.mxu1 %v513_v18  ;;  %p637_p0 = por %p636_p13, %p635_p12 }
  0x4c   :  { %295 = vmatpush1.bf16.msra.mxu0 %v502_v15  ;;  %p638_p1 = pnand %p637_p0, %p631_p11 }
  0x4d   :  { %336 = vmatpush1.bf16.msra.mxu1 %v511_v20 }
  0x4f   :  { %475 = vmatmul.mubr.msk.bf16.vlgmr.msra.gmra.mxu0 %vm151_vm0, %v92_v19 }
  0x50   :  { %476 = vmatmul.mubr.msk.bf16.vlgmr.msra.gmra.mxu1 %vm151_vm0, %v92_v19 }
 0x107   :  { %v189_v23 = vpop.f32.mrf.mxu0  ;;  %v230_v28 = vpop.f32.mrf.mxu1 }
 0x109   :  { %v191_v24 = vpop.f32.mrf.mxu0  ;;  %v232_v32 = vpop.f32.mrf.mxu1 }
 0x10b   :  { %v193_v26 = vpop.f32.mrf.mxu0  ;;  %v234_v36 = vpop.f32.mrf.mxu1 }
 0x10d   :  { %v194_v30 = vpop.f32.mrf.mxu0  ;;  %v235_v41 = vpop.f32.mrf.mxu1 }
 0x10f   :  { %v314_v33 = vpop.f32.mrf.mxu0 }
 0x110   :  { %v315_v34 = vadd.f32 %v314_v33, %v189_v23  ;;  %v355_v45 = vpop.f32.mrf.mxu1 }
 0x111   :  { %v316_v37 = vpop.f32.mrf.mxu0  ;;  %v356_v58 = vadd.f32 %v355_v45, %v230_v28 }
 0x112   :  { %v384_v39 = vadd.f32 %v367_v31, %v315_v34  ;;  %v317_v40 = vadd.f32 %v316_v37, %v191_v24  ;;  %v357_v50 = vpop.f32.mrf.mxu1 }
 0x113   :  { %v318_v42 = vpop.f32.mrf.mxu0  ;;  %v358_v51 = vadd.f32 %v357_v50, %v232_v32  ;;  %v386_v61 = vadd.f32 %v375_v59, %v356_v58 }
 0x114   :  { %v388_v43 = vpack.c.bf16 %v384_v39, %v384_v39  ;;  %v385_v44 = vadd.f32 %v371_v35, %v317_v40  ;;  %v359_v53 = vpop.f32.mrf.mxu1 }
 0x115   :  { %v319_v46 = vpop.f32.mrf.mxu0  ;;  %v387_v54 = vadd.f32 %v379_v47, %v358_v51  ;;  %v390_v63 = vpack.c.bf16 %v386_v61, %v386_v61 }
 0x116   :  { %v477_v48 = vmul.bf16 3216621497, %v388_v43  ;;  %v389_v49 = vpack.c.bf16 %v385_v44, %v385_v44  ;;  %v360_v56 = vpop.f32.mrf.mxu1 }
 0x117   :  { %v391_v57 = vpack.c.bf16 %v387_v54, %v387_v54 }
 0x118   :  { %514 = vpow.bf16 %v477_v48  ;;  %v478_v52 = vmul.bf16 3216621497, %v389_v49 }
 0x119   :  { %v479_v60 = vmul.bf16 3216621497, %v391_v57 }
 0x11a   :  { %516 = vpow.bf16 %v478_v52 }
 0x11b   :  { %518 = vpow.bf16 %v479_v60 }
 0x126   :  { %v515_v62 = vpop.eup %514 }
 0x127   :  { %v396_v0 = vadd.bf16 1065369472, %v515_v62 }
 0x128   :  { %v517_v1 = vpop.eup %516 }
 0x129   :  { %520 = vrcp.bf16 %v396_v0  ;;  %v404_v2 = vadd.bf16 1065369472, %v517_v1  ;;  %v519_v3 = vpop.eup %518 }
 0x12a   :  { %522 = vtanh.bf16 %v390_v63  ;;  %v414_v4 = vadd.bf16 1065369472, %v519_v3 }
 0x12b   :  { %524 = vrcp.bf16 %v404_v2 }
 0x12c   :  { %526 = vrcp.bf16 %v414_v4 }
 0x137   :  { %v521_v5 = vpop.eup %520 }
 0x138   :  { %v523_v6 = vpop.eup %522  ;;  %v398_v7 = vmul.bf16 1065369472, %v521_v5 }
 0x139   :  { %v525_v8 = vpop.eup %524  ;;  %v409_v13 = vunpack.c.l.bf16 %v523_v6 }
 0x13a   :  { %v406_v9 = vmul.bf16 1065369472, %v525_v8  ;;  %v399_v10 = vunpack.c.l.bf16 %v398_v7 }
 0x13c   :  { %v407_v12 = vunpack.c.l.bf16 %v406_v9  ;;  %v420_v15 = vmul.f32 %v409_v13, %v399_v10 }
 0x13e   :  { %v419_v14 = vmul.f32 %v418_v11, %v407_v12 }
 0x140   :  { %v421_v16 = vadd.f32 %v420_v15, %v419_v14 }
 0x142   :  { %528 = vtanh.f32 %v421_v16  ;;  %424 = vst [vmem:[#allocation12] sm:$0xff] %v421_v16 }
 0x143   :  { %641 = shalt.err (!%p638_p1)
}
 0x144   :  { %445 = dma.vmem_to_hbm [thread:$0]  %s443_s25, 128, %s771_s7, [#allocation13]   ;;  %v527_v17 = vpop.eup %526 }
 0x145   :  { %v416_v18 = vmul.bf16 1065369472, %v527_v17  ;;  %s689_s29 = smov [#allocation11]  }
 0x146   :  { %s432_s30 = sshll.u32 %s689_s29, 4  ;;  %s433_s30 = int_to_ptr.vmem [resolvable:$true] %s432_s30 }
 0x147   :  { %v417_v19 = vunpack.c.l.bf16 %v416_v18  ;;  %s650_s8 = scalar_lea.vmem %s433_s30, 128  ;;  %p655_p3 = scmp.lt.s32.totalorder %s433_s30, %s433_s30 }
 0x148   :  { %p651_p2 = scmp.ne.s32.totalorder %s433_s30, %s650_s8  ;;  %p656_p4 = scmp.lt.s32.totalorder %s650_s8, %s650_s8 }
 0x14a   :  { %p657_p5 = por %p656_p4, %p655_p3 }
 0x14c   :  { %p658_p6 = pnand %p657_p5, %p651_p2 }
 0x14f   :  { %v529_v20 = vpop.eup %528 }
 0x150   :  { %v423_v21 = vmul.f32 %v529_v20, %v417_v19 }
 0x152   :  { %425 = vst [vmem:[#allocation11] sm:$0xff] %v423_v21 }
 0x153   :  { %661 = shalt.err (!%p658_p6)
}
 0x154   :  { %435 = dma.vmem_to_hbm [thread:$0]  %s433_s30, 128, %s770_s6, [#allocation4]  }
 0x155   :  { %676 = dma.done.wait [#allocation4], 128  }
 0x156   :  { %677 = vsyncadd [#allocation4], 4294967168 }
 0x157   :  { %678 = dma.done.wait [#allocation13], 128  }
 0x158   :  { %679 = vsyncadd [#allocation13], 4294967168 }
 0x159   :  { %452 = vsyncpa [#allocation3], 1 }
 0x15a   :  { %453 = vsyncpa [#allocation6], 1 }
 0x15b   :  { %454 = vsyncpa [#allocation9], 1 }
 0x15c   :  { %455 = vsyncpa [#allocation4], 1 }
 0x15d   :  { %456 = vsyncpa [#allocation13], 1 }

// kernel: tpu_custom_call.1
= control target key start
LH: loop header
LB: loop body
LE: loop exit
PB: predicated region body
PF: predicated region fallthrough
CT: control target
= control target key end

     0   :  { %13 = vsyncpa [#allocation3], 0  ;;  %s764_s0 = inlined_call_operand.hbm [shape: f32[8,32], index: 0, kind: input, shape index: {}]   ;;  %s765_s1 = inlined_call_operand.hbm [shape: f32[8,32], index: 1, kind: input, shape index: {}]   ;;  %s766_s2 = inlined_call_operand.hbm [shape: f32[8,128], index: 2, kind: input, shape index: {}]   ;;  %s767_s3 = inlined_call_operand.hbm [shape: bf16[32,512], index: 3, kind: input, shape index: {}]   ;;  %s768_s4 = inlined_call_operand.hbm [shape: bf16[32,512], index: 4, kind: input, shape index: {}]   ;;  %s769_s5 = inlined_call_operand.vmem [shape: f32[1,512], index: 5, kind: input, shape index: {}]   ;;  %s770_s6 = inlined_call_operand.hbm [shape: f32[8,128], index: 6, kind: output, shape index: {0}]   ;;  %s771_s7 = inlined_call_operand.hbm [shape: f32[8,128], index: 7, kind: output, shape index: {1}]  }
   0x1   :  { %14 = vsyncpa [#allocation6], 0 }
   0x2   :  { %15 = vsyncpa [#allocation9], 0 }
   0x3   :  { %16 = vsyncpa [#allocation4], 0 }
   0x4   :  { %17 = vsyncpa [#allocation13], 0  ;;  %s680_s24 = smov [#allocation5]   ;;  %s681_s26 = smov [#allocation8]  }
   0x5   :  { %s34_s25 = sshll.u32 %s680_s24, 4  ;;  %s53_s27 = sshll.u32 %s681_s26, 4  ;;  %s35_s25 = int_to_ptr.vmem [resolvable:$true] %s34_s25  ;;  %s54_s27 = int_to_ptr.vmem [resolvable:$true] %s53_s27 }
   0x6   :  { %s538_s28 = scalar_lea.vmem %s35_s25, 128  ;;  %p543_p1 = scmp.lt.s32.totalorder %s35_s25, %s35_s25 }
   0x7   :  { %p539_p0 = scmp.ne.s32.totalorder %s35_s25, %s538_s28  ;;  %p544_p2 = scmp.lt.s32.totalorder %s538_s28, %s538_s28 }
   0x9   :  { %p545_p3 = por %p544_p2, %p543_p1 }
   0xb   :  { %p546_p4 = pnand %p545_p3, %p539_p0 }
   0xd   :  { %549 = shalt.err (!%p546_p4)
}
   0xe   :  { %37 = dma.hbm_to_vmem [thread:$0]  %s765_s1, 128, %s35_s25, [#allocation6]  }
   0xf   :  { %s558_s8 = scalar_lea.vmem %s54_s27, 1024  ;;  %p563_p6 = scmp.lt.s32.totalorder %s54_s27, %s54_s27 }
  0x10   :  { %p559_p5 = scmp.ne.s32.totalorder %s54_s27, %s558_s8  ;;  %p564_p7 = scmp.lt.s32.totalorder %s558_s8, %s558_s8 }
  0x12   :  { %p565_p8 = por %p564_p7, %p563_p6 }
  0x14   :  { %p566_p9 = pnand %p565_p8, %p559_p5 }
  0x16   :  { %569 = shalt.err (!%p566_p9)
}
  0x17   :  { %s682_s9 = smov 256   ;;  %s683_s10 = smov 16  }
  0x18   :  { %59 = dma.hbm_to_vmem [thread:$0]  %s767_s3, 1024, %s54_s27, [#allocation9], %s682_s9, %s682_s9, %s683_s10  }
  0x19   :  { %s684_s13 = smov [#allocation2]   ;;  %s685_s15 = smov [#allocation7]  }
  0x1a   :  { %s24_s14 = sshll.u32 %s684_s13, 4  ;;  %s44_s1 = sshll.u32 %s685_s15, 4  ;;  %s25_s14 = int_to_ptr.vmem [resolvable:$true] %s24_s14  ;;  %s45_s1 = int_to_ptr.vmem [resolvable:$true] %s44_s1 }
  0x1b   :  { %s578_s16 = scalar_lea.vmem %s25_s14, 128  ;;  %p583_p11 = scmp.lt.s32.totalorder %s25_s14, %s25_s14 }
  0x1c   :  { %p579_p10 = scmp.ne.s32.totalorder %s25_s14, %s578_s16  ;;  %p584_p12 = scmp.lt.s32.totalorder %s578_s16, %s578_s16 }
  0x1e   :  { %p585_p13 = por %p584_p12, %p583_p11 }
  0x20   :  { %p586_p0 = pnand %p585_p13, %p579_p10 }
  0x22   :  { %589 = shalt.err (!%p586_p0)
}
  0x23   :  { %27 = dma.hbm_to_vmem [thread:$0]  %s764_s0, 128, %s25_s14, [#allocation3]  }
  0x24   :  { %s598_s19 = scalar_lea.vmem %s45_s1, 128  ;;  %p603_p2 = scmp.lt.s32.totalorder %s45_s1, %s45_s1 }
  0x25   :  { %p599_p1 = scmp.ne.s32.totalorder %s45_s1, %s598_s19  ;;  %p604_p3 = scmp.lt.s32.totalorder %s598_s19, %s598_s19 }
  0x27   :  { %p605_p4 = por %p604_p3, %p603_p2 }
  0x29   :  { %p606_p5 = pnand %p605_p4, %p599_p1 }
  0x2b   :  { %609 = shalt.err (!%p606_p5)
}
  0x2c   :  { %47 = dma.hbm_to_vmem [thread:$0]  %s766_s2, 128, %s45_s1, [#allocation6]  }
  0x2d   :  { %s686_s21 = smov [#allocation10]  }
  0x2e   :  { %s65_s22 = sshll.u32 %s686_s21, 4  ;;  %s66_s22 = int_to_ptr.vmem [resolvable:$true] %s65_s22 }
  0x2f   :  { %s618_s23 = scalar_lea.vmem %s66_s22, 1024  ;;  %p623_p7 = scmp.lt.s32.totalorder %s66_s22, %s66_s22 }
  0x30   :  { %p619_p6 = scmp.ne.s32.totalorder %s66_s22, %s618_s23  ;;  %p624_p8 = scmp.lt.s32.totalorder %s618_s23, %s618_s23 }
  0x32   :  { %p625_p9 = por %p624_p8, %p623_p7 }
  0x34   :  { %p626_p10 = pnand %p625_p9, %p619_p6 }
  0x36   :  { %629 = shalt.err (!%p626_p10)
}
  0x37   :  { %71 = dma.hbm_to_vmem [thread:$0]  %s768_s4, 1024, %s66_s22, [#allocation9], %s682_s9, %s682_s9, %s683_s10  }
  0x38   :  { %670 = dma.done.wait [#allocation3], 128  }
  0x39   :  { %671 = vsyncadd [#allocation3], 4294967168 }
  0x3a   :  { %672 = dma.done.wait [#allocation6], 256  }
  0x3b   :  { %673 = vsyncadd [#allocation6], 4294967040 }
  0x3c   :  { %674 = dma.done.wait [#allocation9], 2048  }
  0x3d   :  { %675 = vsyncadd [#allocation9], 4294965248  ;;  %v687_v0 = vmov 0   ;;  %v490_v1 = vld [vmem:[#allocation10 + $0x24] ss:$16 sps:$4 sm:$0xff]   ;;  %vm151_vm0 = vcmask 261120   ;;  %v364_v21 = vlaneseq }
  0x3e   :  { %187 = vmatprep.mubr.bf16.mxu0 %v687_v0  ;;  %228 = vmatprep.mubr.bf16.mxu1 %v687_v0  ;;  %v492_v2 = vld [vmem:[#allocation10 + $0x20] ss:$16 sps:$4 sm:$0xff]   ;;  %v493_v3 = vld [vmem:[#allocation10 + $0x4] ss:$16 sps:$4 sm:$0xff]   ;;  %v499_v7 = vld [vmem:[#allocation10 + $0x2c] ss:$16 sps:$4 sm:$0xff]  }
  0x3f   :  { %167 = vmatprep.subr.bf16.mxu0 %v490_v1  ;;  %v495_v4 = vld [vmem:[#allocation10] ss:$16 sps:$4 sm:$0xff]   ;;  %v498_v6 = vld [vmem:[#allocation8 + $0x24] ss:$16 sps:$4 sm:$0xff]   ;;  %v501_v8 = vld [vmem:[#allocation10 + $0x28] ss:$16 sps:$4 sm:$0xff]   ;;  %208 = vmatprep.subr.bf16.mxu1 %v499_v7 }
  0x40   :  { %168 = vmatpush1.bf16.msra.mxu0 %v492_v2  ;;  %v93_v5 = vld [vmem:[#allocation5] sm:$0xff]  ;;  %v505_v11 = vld [vmem:[#allocation10 + $0xc] ss:$16 sps:$4 sm:$0xff]   ;;  %209 = vmatpush1.bf16.msra.mxu1 %v501_v8  ;;  %v507_v13 = vld [vmem:[#allocation10 + $0x8] ss:$16 sps:$4 sm:$0xff]   ;;  %v365_v22 = vshrl.u32 %v364_v21, 7 }
  0x41   :  { %169 = vmatprep.subr.bf16.mxu0 %v493_v3  ;;  %v94_v9 = vpack.c.bf16 %v93_v5, %v93_v5  ;;  %v496_v10 = vld [vmem:[#allocation8 + $0x20] ss:$16 sps:$4 sm:$0xff]   ;;  %v504_v12 = vld [vmem:[#allocation8 + $0x4] ss:$16 sps:$4 sm:$0xff]   ;;  %210 = vmatprep.subr.bf16.mxu1 %v505_v11  ;;  %v510_v14 = vld [vmem:[#allocation8 + $0x2c] ss:$16 sps:$4 sm:$0xff]  }
  0x42   :  { %v502_v15 = vld [vmem:[#allocation8] ss:$16 sps:$4 sm:$0xff]   ;;  %v91_v16 = vld [vmem:[#allocation2] sm:$0xff]  ;;  %v366_v25 = vsub.s32 0, %v365_v22  ;;  %v370_v29 = vsub.s32 1, %v365_v22  ;;  %v378_v38 = vsub.s32 3, %v365_v22 }
  0x43   :  { %v508_v17 = vld [vmem:[#allocation8 + $0x28] ss:$16 sps:$4 sm:$0xff]   ;;  %v513_v18 = vld [vmem:[#allocation8 + $0xc] ss:$16 sps:$4 sm:$0xff]   ;;  %v92_v19 = vpack.c.bf16 %v91_v16, %v91_v16  ;;  %v374_v55 = vsub.s32 2, %v365_v22 }
  0x44   :  { %170 = vmatpush1.bf16.msra.mxu0 %v495_v4  ;;  %211 = vmatpush1.bf16.msra.mxu1 %v507_v13  ;;  %v511_v20 = vld [vmem:[#allocation8 + $0x8] ss:$16 sps:$4 sm:$0xff]  }
  0x45   :  { %292 = vmatprep.subr.bf16.mxu0 %v498_v6  ;;  %333 = vmatprep.subr.bf16.mxu1 %v510_v14  ;;  %v362_v27 = vld [vmem:[%s769_s5] sm:$0xf]  ;;  %v418_v11 = vld [vmem:[#allocation7] sm:$0xff]  ;;  %s688_s5 = smov [#allocation12]  }
  0x46   :  { %v367_v31 = vrot.slane %v362_v27, %v366_v25  ;;  %v371_v35 = vrot.slane %v362_v27, %v370_v29  ;;  %v379_v47 = vrot.slane %v362_v27, %v378_v38  ;;  %v375_v59 = vrot.slane %v362_v27, %v374_v55  ;;  %s442_s25 = sshll.u32 %s688_s5, 4  ;;  %s443_s25 = int_to_ptr.vmem [resolvable:$true] %s442_s25 }
  0x47   :  { %465 = vmatmul.mubr.msk.bf16.vlgmr.msra.gmra.mxu0 %vm151_vm0, %v94_v9  ;;  %466 = vmatmul.mubr.msk.bf16.vlgmr.msra.gmra.mxu1 %vm151_vm0, %v94_v9  ;;  %s630_s26 = scalar_lea.vmem %s443_s25, 128  ;;  %p635_p12 = scmp.lt.s32.totalorder %s443_s25, %s443_s25 }
  0x48   :  { %293 = vmatpush1.bf16.msra.mxu0 %v496_v10  ;;  %312 = vmatprep.mubr.bf16.mxu0 %v687_v0  ;;  %p631_p11 = scmp.ne.s32.totalorder %s443_s25, %s630_s26  ;;  %p636_p13 = scmp.lt.s32.totalorder %s630_s26, %s630_s26 }
  0x49   :  { %294 = vmatprep.subr.bf16.mxu0 %v504_v12  ;;  %334 = vmatpush1.bf16.msra.mxu1 %v508_v17 }
  0x4a   :  { %353 = vmatprep.mubr.bf16.mxu1 %v687_v0  ;;  %335 = vmatprep.subr.bf16.mxu1 %v513_v18  ;;  %p637_p0 = por %p636_p13, %p635_p12 }
  0x4c   :  { %295 = vmatpush1.bf16.msra.mxu0 %v502_v15  ;;  %p638_p1 = pnand %p637_p0, %p631_p11 }
  0x4d   :  { %336 = vmatpush1.bf16.msra.mxu1 %v511_v20 }
  0x4f   :  { %475 = vmatmul.mubr.msk.bf16.vlgmr.msra.gmra.mxu0 %vm151_vm0, %v92_v19 }
  0x50   :  { %476 = vmatmul.mubr.msk.bf16.vlgmr.msra.gmra.mxu1 %vm151_vm0, %v92_v19 }
 0x107   :  { %v189_v23 = vpop.f32.mrf.mxu0  ;;  %v230_v28 = vpop.f32.mrf.mxu1 }
 0x109   :  { %v191_v24 = vpop.f32.mrf.mxu0  ;;  %v232_v32 = vpop.f32.mrf.mxu1 }
 0x10b   :  { %v193_v26 = vpop.f32.mrf.mxu0  ;;  %v234_v36 = vpop.f32.mrf.mxu1 }
 0x10d   :  { %v194_v30 = vpop.f32.mrf.mxu0  ;;  %v235_v41 = vpop.f32.mrf.mxu1 }
 0x10f   :  { %v314_v33 = vpop.f32.mrf.mxu0 }
 0x110   :  { %v315_v34 = vadd.f32 %v314_v33, %v189_v23  ;;  %v355_v45 = vpop.f32.mrf.mxu1 }
 0x111   :  { %v316_v37 = vpop.f32.mrf.mxu0  ;;  %v356_v58 = vadd.f32 %v355_v45, %v230_v28 }
 0x112   :  { %v384_v39 = vadd.f32 %v367_v31, %v315_v34  ;;  %v317_v40 = vadd.f32 %v316_v37, %v191_v24  ;;  %v357_v50 = vpop.f32.mrf.mxu1 }
 0x113   :  { %v318_v42 = vpop.f32.mrf.mxu0  ;;  %v358_v51 = vadd.f32 %v357_v50, %v232_v32  ;;  %v386_v61 = vadd.f32 %v375_v59, %v356_v58 }
 0x114   :  { %v388_v43 = vpack.c.bf16 %v384_v39, %v384_v39  ;;  %v385_v44 = vadd.f32 %v371_v35, %v317_v40  ;;  %v359_v53 = vpop.f32.mrf.mxu1 }
 0x115   :  { %v319_v46 = vpop.f32.mrf.mxu0  ;;  %v387_v54 = vadd.f32 %v379_v47, %v358_v51  ;;  %v390_v63 = vpack.c.bf16 %v386_v61, %v386_v61 }
 0x116   :  { %v477_v48 = vmul.bf16 3216621497, %v388_v43  ;;  %v389_v49 = vpack.c.bf16 %v385_v44, %v385_v44  ;;  %v360_v56 = vpop.f32.mrf.mxu1 }
 0x117   :  { %v391_v57 = vpack.c.bf16 %v387_v54, %v387_v54 }
 0x118   :  { %514 = vpow.bf16 %v477_v48  ;;  %v478_v52 = vmul.bf16 3216621497, %v389_v49 }
 0x119   :  { %v479_v60 = vmul.bf16 3216621497, %v391_v57 }
 0x11a   :  { %516 = vpow.bf16 %v478_v52 }
 0x11b   :  { %518 = vpow.bf16 %v479_v60 }
 0x126   :  { %v515_v62 = vpop.eup %514 }
 0x127   :  { %v396_v0 = vadd.bf16 1065369472, %v515_v62 }
 0x128   :  { %v517_v1 = vpop.eup %516 }
 0x129   :  { %520 = vrcp.bf16 %v396_v0  ;;  %v404_v2 = vadd.bf16 1065369472, %v517_v1  ;;  %v519_v3 = vpop.eup %518 }
 0x12a   :  { %522 = vtanh.bf16 %v390_v63  ;;  %v414_v4 = vadd.bf16 1065369472, %v519_v3 }
 0x12b   :  { %524 = vrcp.bf16 %v404_v2 }
 0x12c   :  { %526 = vrcp.bf16 %v414_v4 }
 0x137   :  { %v521_v5 = vpop.eup %520 }
 0x138   :  { %v523_v6 = vpop.eup %522  ;;  %v398_v7 = vmul.bf16 1065369472, %v521_v5 }
 0x139   :  { %v525_v8 = vpop.eup %524  ;;  %v409_v13 = vunpack.c.l.bf16 %v523_v6 }
 0x13a   :  { %v406_v9 = vmul.bf16 1065369472, %v525_v8  ;;  %v399_v10 = vunpack.c.l.bf16 %v398_v7 }
 0x13c   :  { %v407_v12 = vunpack.c.l.bf16 %v406_v9  ;;  %v420_v15 = vmul.f32 %v409_v13, %v399_v10 }
 0x13e   :  { %v419_v14 = vmul.f32 %v418_v11, %v407_v12 }
 0x140   :  { %v421_v16 = vadd.f32 %v420_v15, %v419_v14 }
 0x142   :  { %528 = vtanh.f32 %v421_v16  ;;  %424 = vst [vmem:[#allocation12] sm:$0xff] %v421_v16 }
 0x143   :  { %641 = shalt.err (!%p638_p1)
}
 0x144   :  { %445 = dma.vmem_to_hbm [thread:$0]  %s443_s25, 128, %s771_s7, [#allocation13]   ;;  %v527_v17 = vpop.eup %526 }
 0x145   :  { %v416_v18 = vmul.bf16 1065369472, %v527_v17  ;;  %s689_s29 = smov [#allocation11]  }
 0x146   :  { %s432_s30 = sshll.u32 %s689_s29, 4  ;;  %s433_s30 = int_to_ptr.vmem [resolvable:$true] %s432_s30 }
 0x147   :  { %v417_v19 = vunpack.c.l.bf16 %v416_v18  ;;  %s650_s8 = scalar_lea.vmem %s433_s30, 128  ;;  %p655_p3 = scmp.lt.s32.totalorder %s433_s30, %s433_s30 }
 0x148   :  { %p651_p2 = scmp.ne.s32.totalorder %s433_s30, %s650_s8  ;;  %p656_p4 = scmp.lt.s32.totalorder %s650_s8, %s650_s8 }
 0x14a   :  { %p657_p5 = por %p656_p4, %p655_p3 }
 0x14c   :  { %p658_p6 = pnand %p657_p5, %p651_p2 }
 0x14f   :  { %v529_v20 = vpop.eup %528 }
 0x150   :  { %v423_v21 = vmul.f32 %v529_v20, %v417_v19 }
 0x152   :  { %425 = vst [vmem:[#allocation11] sm:$0xff] %v423_v21 }
 0x153   :  { %661 = shalt.err (!%p658_p6)
}
 0x154   :  { %435 = dma.vmem_to_hbm [thread:$0]  %s433_s30, 128, %s770_s6, [#allocation4]  }
 0x155   :  { %676 = dma.done.wait [#allocation4], 128  }
 0x156   :  { %677 = vsyncadd [#allocation4], 4294967168 }
 0x157   :  { %678 = dma.done.wait [#allocation13], 128  }
 0x158   :  { %679 = vsyncadd [#allocation13], 4294967168 }
 0x159   :  { %452 = vsyncpa [#allocation3], 1 }
 0x15a   :  { %453 = vsyncpa [#allocation6], 1 }
 0x15b   :  { %454 = vsyncpa [#allocation9], 1 }
 0x15c   :  { %455 = vsyncpa [#allocation4], 1 }
 0x15d   :  { %456 = vsyncpa [#allocation13], 1 }

</bundles_post_ra>
